<compile_context>
chip_gen: v5e
topology: v5e:2x2
jax: 0.10.0
libtpu: 0.0.40
codegen_flags: <defaults>
</compile_context>

<pallas_src>
import functools

import jax
import jax.numpy as jnp
from jax.experimental import pallas as pl
from jax.experimental.pallas import tpu as pltpu

LANES = 128          # vreg lane width  (last dim)
SUBLANES = 8         # vreg sublane height
BLOCK_ROWS = 8192    # rows per grid step: (8192, 128) f32 block = 4 MiB


def _llaf_kernel(params_ref, w_ref, o_ref, *, approx):
    # params_ref lives in SMEM:  params_ref[0] = c = wp^2 * g / (1 + g^2)
    c = params_ref[0]
    w = w_ref[...].astype(jnp.float32)            # f32 compute regardless of I/O dtype
    inv = pl.reciprocal(w * w, approx=approx)     # EUP path (approx only for bf16/f16 I/O)
    # c * w * (1 / w^2)  ==  lorentz(w; w0=0, wp, g);  at w == 0: 0 * inf -> NaN,
    # matching the PyTorch module's 0/0 behaviour.
    o_ref[...] = (c * w * inv).astype(o_ref.dtype)


def _fold_params(wp, g):
    """Fold both learnable scalars into a single f32 constant c."""
    wp32 = jnp.asarray(wp, jnp.float32)
    g32 = jnp.asarray(g, jnp.float32)
    return (wp32 * wp32 * g32) / (1.0 + g32 * g32)


def llaf_reference(w, wp, g):
    """Pure-JAX reference matching the PyTorch lorentzActivation (w0 = 0)."""
    w = w.astype(jnp.float32)
    wp = jnp.asarray(wp, jnp.float32)
    g = jnp.asarray(g, jnp.float32)
    w0 = 0.0
    num = (wp ** 2) * w * g
    den = (w0 ** 2 - w) ** 2 + (w * g) ** 2
    return num / den


@jax.jit
def _llaf_fused(x, wp, g):
    """Fused XLA elementwise fallback (already at the HBM roofline: 2N bytes)."""
    return llaf_reference(x, wp, g).astype(x.dtype)


@functools.partial(jax.jit, static_argnames=("block_rows", "core_parallel"))
def llaf_pallas(x, wp, g, *, block_rows=None, core_parallel=False):
    """Apply the Lorentz activation elementwise via a Pallas TPU kernel.

    block_rows:    rows per grid step of the [rows, 128] slab (default BLOCK_ROWS).
    core_parallel: set True on v7x (2 TensorCores/chip) if a profile shows only
                   one TC streaming; the default "parallel" is safe everywhere.
    """
    orig_shape = x.shape
    dtype = x.dtype
    n = x.size
    if n == 0:
        return x

    # Truly unaligned sizes (rare for NN activations): the fused XLA elementwise
    # is already read-N + write-N; wrapping a pallas_call in pad+slice would add
    # two extra full passes over HBM (perf-review item 1), so don't.
    if n % LANES != 0:
        return _llaf_fused(x, wp, g)

    # Lane-dense slab [rows, 128]; reshape of a contiguous array is a free bitcast.
    rows = n // LANES
    slab = x.reshape(rows, LANES)

    # Largest block that fits comfortably in VMEM; single full-extent block for
    # small inputs (no padding needed), otherwise a multiple of 8 sublanes with
    # a possibly-ragged last block (Pallas masks its out-of-bounds writeback).
    bs = BLOCK_ROWS if block_rows is None else int(block_rows)
    if rows <= bs:
        bs = rows
    else:
        bs = max(SUBLANES, (bs // SUBLANES) * SUBLANES)
    grid = (pl.cdiv(rows, bs),)

    params = _fold_params(wp, g).reshape(1)

    # bf16/f16 outputs: approx reciprocal is a single EUP op and well inside the
    # output precision; keep the exact reciprocal for f32 outputs (1e-5 rtol).
    approx = (dtype == jnp.bfloat16) or (dtype == jnp.float16)

    cost = pl.CostEstimate(
        flops=3 * n,                        # w*w, c*w, *inv
        transcendentals=n,                  # one reciprocal per element
        bytes_accessed=2 * n * dtype.itemsize,
    )

    # v7x: both TensorCores share ~3.2 TB/s HBM; CORE_PARALLEL splits the grid
    # axis across them.  Default "parallel" is safe on single-TC v5e/v6e.
    dim_sem = (pltpu.CORE_PARALLEL,) if core_parallel else ("parallel",)

    out = pl.pallas_call(
        functools.partial(_llaf_kernel, approx=approx),
        out_shape=jax.ShapeDtypeStruct((rows, LANES), dtype),
        grid_spec=pltpu.PrefetchScalarGridSpec(
            num_scalar_prefetch=0,
            grid=grid,
            in_specs=[
                pl.BlockSpec(memory_space=pltpu.MemorySpace.SMEM),   # folded scalar c
                pl.BlockSpec((bs, LANES), lambda i: (i, 0)),         # w block
            ],
            out_specs=pl.BlockSpec((bs, LANES), lambda i: (i, 0)),
        ),
        compiler_params=pltpu.CompilerParams(
            dimension_semantics=dim_sem,
            # 2x(in+out) 4 MiB blocks + slack; explicitly raises v5e's 16 MiB
            # scoped default, stays within v6e/v7x defaults and v7x physical.
            vmem_limit_bytes=32 * 1024 * 1024,
        ),
        cost_estimate=cost,
    )(params, slab)

    return out.reshape(orig_shape)


def llaf_forward(x, wp, g, *, min_pallas_elems=1 << 20):
    """Size-dispatched wrapper: small tensors (and sizes not a multiple of 128)
    go through the fused XLA expression (a pallas_call launch costs more than
    streaming a few MiB); larger aligned tensors take the Pallas kernel path."""
    if x.size < min_pallas_elems or x.size % LANES != 0:
        return _llaf_fused(x, wp, g)
    return llaf_pallas(x, wp, g)


if __name__ == "__main__":
    key = jax.random.PRNGKey(0)
    # NCHW input, small shape consistent with a conv-style activation map.
    x = jax.random.normal(key, (2, 4, 16, 16), dtype=jnp.float32)

    # Deterministic parameter values (the module allows passing g, wp to __init__).
    wp = 0.7
    g = 0.3

    y_ref = llaf_reference(x, wp, g)

    # 1) f32 Pallas path (single full-extent block, exact reciprocal).
    y = jax.block_until_ready(llaf_pallas(x, wp, g))
    assert y.shape == x.shape and y.dtype == x.dtype
    assert jnp.allclose(y, y_ref, rtol=1e-5, atol=1e-5), "f32 pallas path mismatch"

    # 2) Ragged last block: rows = 30 with block_rows = 8 -> grid of 4 steps,
    #    final block only partially valid; Pallas must mask its writeback.
    x2 = jax.random.normal(jax.random.PRNGKey(1), (5, 2, 3, 128), dtype=jnp.float32)
    y2 = jax.block_until_ready(llaf_pallas(x2, wp, g, block_rows=8))
    assert jnp.allclose(y2, llaf_reference(x2, wp, g), rtol=1e-5, atol=1e-5), \
        "ragged-block pallas path mismatch"

    # 3) bf16 I/O exercises the approx-reciprocal (EUP) path.
    xb = x.astype(jnp.bfloat16)
    yb = jax.block_until_ready(llaf_pallas(xb, wp, g))
    assert yb.dtype == jnp.bfloat16
    assert jnp.allclose(yb.astype(jnp.float32), llaf_reference(xb, wp, g),
                        rtol=5e-2, atol=5e-2), "bf16 pallas path mismatch"

    # 4) Dispatching wrapper (tiny tensor -> fused XLA path).
    y3 = jax.block_until_ready(llaf_forward(x, wp, g))
    assert jnp.allclose(y3, y_ref, rtol=1e-5, atol=1e-5), "dispatch path mismatch"

    print("KERNEL_OK")
</pallas_src>

<mosaic_0001>
module attributes {stable_mosaic.version = 11 : i64} {
  func.func @_llaf_kernel(%arg0: i32, %arg1: memref<1xf32, #tpu.memory_space<smem>>, %arg2: memref<16x128xf32, #tpu.memory_space<vmem>>, %arg3: memref<16x128xf32, #tpu.memory_space<vmem>>) attributes {dimension_semantics = [#tpu.dimension_semantics<parallel>], iteration_bounds = array<i64: 1>, scalar_prefetch = 0 : i64, scratch_operands = 0 : i64, tpu.core_type = #tpu.core_type<tc>, window_params = [{transform_indices = @transform_0, window_bounds = array<i64: 1>}, {transform_indices = @transform_1, window_bounds = array<i64: 16, 128>}, {transform_indices = @transform_2, window_bounds = array<i64: 16, 128>}]} {
    %c0 = arith.constant 0 : index
    %0 = memref.load %arg1[%c0] : memref<1xf32, #tpu.memory_space<smem>>
    %c0_0 = arith.constant 0 : index
    %c0_1 = arith.constant 0 : index
    %1 = vector.load %arg2[%c0_0, %c0_1] : memref<16x128xf32, #tpu.memory_space<vmem>>, vector<16x128xf32>
    %2 = arith.mulf %1, %1 : vector<16x128xf32>
    %3 = tpu.reciprocal %2 : vector<16x128xf32> -> vector<16x128xf32>
    %4 = vector.broadcast %0 : f32 to vector<16x128xf32>
    %5 = arith.mulf %4, %1 : vector<16x128xf32>
    %6 = arith.mulf %5, %3 : vector<16x128xf32>
    %c0_2 = arith.constant 0 : index
    %c0_3 = arith.constant 0 : index
    %7 = vector.load %arg3[%c0_2, %c0_3] : memref<16x128xf32, #tpu.memory_space<vmem>>, vector<16x128xf32>
    tpu.vector_store %arg3[%c0_2, %c0_3], %6 {strides = array<i32>} : memref<16x128xf32, #tpu.memory_space<vmem>>, vector<16x128xf32>,
    return
  }
  func.func @transform_0(%arg0: i32) -> i32 {
    %c0_i32 = arith.constant 0 : i32
    %c0_i32_0 = arith.constant 0 : i32
    return %c0_i32 : i32
  }
  func.func @transform_1(%arg0: i32) -> (i32, i32) {
    %c0_i32 = arith.constant 0 : i32
    %c0_i32_0 = arith.constant 0 : i32
    return %arg0, %c0_i32 : i32, i32
  }
  func.func @transform_2(%arg0: i32) -> (i32, i32) {
    %c0_i32 = arith.constant 0 : i32
    %c0_i32_0 = arith.constant 0 : i32
    return %arg0, %c0_i32 : i32, i32
  }
}

</mosaic_0001>

<bundles_post_ra>
// kernel: llaf_pallas.1
= control target key start
LH: loop header
LB: loop body
LE: loop exit
PB: predicated region body
PF: predicated region fallthrough
CT: control target
= control target key end

     0   :  { %s90_s1 = inlined_call_operand.vmem [shape: f32[16,128], index: 1, kind: input, shape index: {}]   ;;  %s91_s0 = inlined_call_operand.<no memory space> [shape: f32[1], index: 0, kind: input, shape index: {}]   ;;  %s92_s2 = inlined_call_operand.vmem [shape: f32[16,128], index: 2, kind: output, shape index: {}]  }
   0x1   :  { %v13_v0 = vld [vmem:[%s90_s1] sm:$0xff]  ;;  %v14_v1 = vld [vmem:[%s90_s1 + $0x8] sm:$0xff]  ;;  %v45_v8 = vstv %s91_s0 }
   0x2   :  { %v15_v2 = vmul.f32 %v13_v0, %v13_v0  ;;  %v16_v3 = vmul.f32 %v14_v1, %v14_v1  ;;  %v46_v19 = vmul.f32 %v45_v8, %v13_v0  ;;  %v47_v22 = vmul.f32 %v45_v8, %v14_v1 }
   0x4   :  { %56 = vrcp.f32 %v15_v2  ;;  %vm22_vm0 = vweird.f32 %v15_v2  ;;  %v28_v7 = vand.u32 2147483648, %v15_v2  ;;  %v26_v11 = vand.u32 2147483647, %v15_v2 }
   0x5   :  { %58 = vrcp.f32 %v16_v3  ;;  %v42_v12 = vand.u32 2147483648, %v16_v3  ;;  %vm36_vm2 = vweird.f32 %v16_v3  ;;  %v40_v14 = vand.u32 2147483647, %v16_v3 }
   0x6   :  { %v29_v16 = vor.u32 1.1754944e-38, %v28_v7  ;;  %vm27_vm5 = vcmp.eq.f32.partialorder %v26_v11, 8.507059e+37 }
   0x7   :  { %v43_v20 = vor.u32 1.1754944e-38, %v42_v12  ;;  %vm41_vm7 = vcmp.eq.f32.partialorder %v40_v14, 8.507059e+37 }
   0xa   :  { %v57_v4 = vpop.eup %56 }
   0xb   :  { %v59_v5 = vpop.eup %58  ;;  %v18_v6 = vmul.f32 %v57_v4, %v15_v2  ;;  %vm23_vm1 = vweird.f32 %v57_v4 }
   0xc   :  { %v32_v9 = vmul.f32 %v59_v5, %v16_v3  ;;  %vm37_vm3 = vweird.f32 %v59_v5  ;;  %vm24_vm4 = vmor %vm22_vm0, %vm23_vm1 }
   0xd   :  { %v19_v10 = vsub.f32 1.0, %v18_v6  ;;  %vm38_vm6 = vmor %vm36_vm2, %vm37_vm3 }
   0xe   :  { %v33_v13 = vsub.f32 1.0, %v32_v9 }
   0xf   :  { %v20_v15 = vmul.f32 %v57_v4, %v19_v10 }
  0x10   :  { %v34_v17 = vmul.f32 %v59_v5, %v33_v13 }
  0x11   :  { %v21_v18 = vadd.f32 %v57_v4, %v20_v15 }
  0x12   :  { %v35_v21 = vadd.f32 %v59_v5, %v34_v17 }
  0x13   :  { %v25_v23 = vsel %vm24_vm4, %v57_v4, %v21_v18 }
  0x14   :  { %v30_v24 = vsel %vm27_vm5, %v29_v16, %v25_v23  ;;  %v39_v25 = vsel %vm38_vm6, %v59_v5, %v35_v21 }
  0x15   :  { %v48_v26 = vmul.f32 %v46_v19, %v30_v24  ;;  %v44_v27 = vsel %vm41_vm7, %v43_v20, %v39_v25 }
  0x16   :  { %v49_v28 = vmul.f32 %v47_v22, %v44_v27 }
  0x17   :  { %50 = vst [vmem:[%s92_s2] sm:$0xff] %v48_v26 }
  0x18   :  { %51 = vst [vmem:[%s92_s2 + $0x8] sm:$0xff] %v49_v28 }

</bundles_post_ra>
